<compile_context>
chip_gen: v6e
topology: v6e:2x2x1
jax: 0.10.0
libtpu: 0.0.40
codegen_flags: <defaults>
</compile_context>

<pallas_src>
import functools

import jax
import jax.numpy as jnp
from jax.experimental import pallas as pl
from jax.experimental.pallas import tpu as pltpu


_LANE = 128


def _round_up(x, m):
    return (x + m - 1) // m * m


def _hw_budgets():
    """(per-input-block byte target, vmem_limit_bytes), tuned per TPU generation."""
    try:
        vmem_cap = pltpu.get_tpu_info().vmem_capacity_bytes
    except Exception:
        return 4 << 20, 48 << 20            # conservative default, safe on any gen
    if vmem_cap >= (100 << 20):              # v5e / v6e: 128 MiB physical VMEM
        return 6 << 20, 80 << 20
    return 3 << 20, 44 << 20                 # v7x: 64 MiB physical VMEM


def _select_compact_lane_block(L, period, t_rows, itemsize, target_bytes, vmem_limit):
    """Pick a lane block that is a multiple of `period` (compact-weight path).

    Returns l_blk or None if the compact path is not usable.  Preference order:
    fits the byte target, EVEN number of lane blocks (v7x: 2 TCs), >=2 blocks,
    largest block.
    """
    if period <= 0 or L % period != 0:
        return None
    b_rep = L // period
    cands = []
    for r in range(1, b_rep + 1):
        if b_rep % r:
            continue
        lb = r * period
        if lb % _LANE == 0 or lb == L:       # (8,128) rule or full-dim exemption
            cands.append(lb)
    if not cands:
        return None
    in_bytes = lambda lb: t_rows * lb * itemsize
    fits = [lb for lb in cands if in_bytes(lb) <= target_bytes]
    if not fits:
        lb = min(cands)
        # rough headroom check: in (x2 dbuf) + out (x2 dbuf) + f32 acc + slack
        return lb if in_bytes(lb) <= vmem_limit // 8 else None
    even = [lb for lb in fits if (L // lb) % 2 == 0]
    multi = [lb for lb in fits if (L // lb) >= 2]
    pool = even or multi or fits
    return max(pool)


def _select_generic_lane_block(L, t_rows, itemsize, target_bytes):
    """Lane block for the expanded-weight fallback (L is a multiple of 128)."""
    if L <= _LANE:
        return L
    max_lanes = max(_LANE, (target_bytes // max(t_rows * itemsize, 1)) // _LANE * _LANE)
    cands = [c for c in range(_LANE, min(L, max_lanes) + 1, _LANE) if L % c == 0]
    if not cands:
        cands = [_LANE]
    even = [c for c in cands if (L // c) % 2 == 0]
    multi = [c for c in cands if (L // c) >= 2]
    pool = even or multi or cands
    return max(pool)


def _dw_temporal_conv_kernel(w_ref, x_ref, o_ref, *, k_rf, pad):
    """Depthwise temporal conv on one lane block, halo handled in-kernel.

    w_ref: (K, l_blk)     per-lane weight rows (VMEM-resident for the compact path).
    x_ref: (T, l_blk)     un-padded time-major input slab.
    o_ref: (T_out, l_blk) lane-dense output block; T_out = T + 2*pad - K + 1.
    """
    t_in = x_ref.shape[0]
    t_out = o_ref.shape[0]
    w = w_ref[...].astype(jnp.float32)               # tiny (K, l_blk)

    # Interior output rows: every tap reads in-bounds input -> one fused FMA
    # chain initialized from the first tap (no zero-fill pass).
    t_mid = t_in - k_rf + 1
    if t_mid > 0:
        acc = None
        for k in range(k_rf):                        # static, tiny receptive field
            term = w[k:k + 1, :] * x_ref[k:k + t_mid, :].astype(jnp.float32)
            acc = term if acc is None else acc + term
        o_ref[pad:pad + t_mid, :] = acc.astype(o_ref.dtype)

    # Boundary rows (only exist for pad > 0, or T < k_rf): computed per-row with
    # statically clipped taps, so the wrapper never zero-pads the time axis in HBM.
    interior = range(pad, pad + max(t_mid, 0))
    for t in range(t_out):
        if t in interior:
            continue
        acc = None
        for k in range(k_rf):
            src = t - pad + k
            if src < 0 or src >= t_in:
                continue                              # implicit zero padding
            term = w[k:k + 1, :] * x_ref[src:src + 1, :].astype(jnp.float32)
            acc = term if acc is None else acc + term
        if acc is None:
            acc = jnp.zeros((1,) + tuple(o_ref.shape[1:]), jnp.float32)
        o_ref[t:t + 1, :] = acc.astype(o_ref.dtype)


def _dw_time_conv_single(x2d, w_period, *, period, k_rf, pad, target_bytes, vmem_limit):
    """y[t, l] = sum_k w[k, l] * x[t - pad + k, l] (x zero outside [0, T))."""
    T, L = x2d.shape
    t_out = T + 2 * pad - k_rf + 1
    assert t_out >= 1, "time_rf too large for this sequence length"
    itemsize = jnp.dtype(x2d.dtype).itemsize
    L_orig = L

    l_blk = _select_compact_lane_block(L, period, T, itemsize, target_bytes, vmem_limit)
    if l_blk is not None:
        # Compact path: weight tiled only to ONE block's width; constant
        # index_map keeps it VMEM-resident (fetched once, no per-step DMA).
        reps = l_blk // period
        w_arr = w_period if reps == 1 else jnp.tile(w_period, (1, reps))   # (K, l_blk), tiny
        w_spec = pl.BlockSpec((k_rf, l_blk), lambda j: (0, 0))
    else:
        # Fallback (rare: period not lane-aligned AND too big for one block):
        # expand the weight across all lanes and DMA a block of it per step.
        w_arr = jnp.tile(w_period, (1, L // period))                       # (K, L)
        if L % _LANE != 0:
            Lp = _round_up(L, _LANE)
            x2d = jnp.pad(x2d, ((0, 0), (0, Lp - L)))
            w_arr = jnp.pad(w_arr, ((0, 0), (0, Lp - L)))
            L = Lp
        l_blk = _select_generic_lane_block(L, T, itemsize, target_bytes)
        w_spec = pl.BlockSpec((k_rf, l_blk), lambda j: (0, j))

    n_blocks = L // l_blk
    kernel = functools.partial(_dw_temporal_conv_kernel, k_rf=k_rf, pad=pad)

    cost = pl.CostEstimate(
        flops=2 * k_rf * t_out * L,
        transcendentals=0,
        bytes_accessed=(T * L + t_out * L) * itemsize
        + int(w_arr.size) * jnp.dtype(w_arr.dtype).itemsize,
    )

    out = pl.pallas_call(
        kernel,
        out_shape=jax.ShapeDtypeStruct((t_out, L), x2d.dtype),
        grid=(n_blocks,),
        in_specs=[
            w_spec,                                            # weights (resident or per-block)
            pl.BlockSpec((T, l_blk), lambda j: (0, j)),        # un-padded input slab
        ],
        out_specs=pl.BlockSpec((t_out, l_blk), lambda j: (0, j)),
        compiler_params=pltpu.CompilerParams(
            dimension_semantics=("parallel",),
            vmem_limit_bytes=int(vmem_limit)),
        cost_estimate=cost,
    )(w_arr, x2d)

    if L != L_orig:
        # Only on the lane-padded fallback path.  A masked tail-block store
        # would avoid this extra output pass, but this path is a corner case.
        out = out[:, :L_orig]
    return out


def _dw_time_conv(x2d, w_period, *, period, k_rf, pad, max_in_rows=None):
    T, L = x2d.shape
    t_out = T + 2 * pad - k_rf + 1
    assert t_out >= 1, "time_rf too large for this sequence length"
    target_bytes, vmem_limit = _hw_budgets()
    itemsize = jnp.dtype(x2d.dtype).itemsize

    if max_in_rows is None:
        min_lane = period if period % _LANE == 0 else _LANE
        min_lane = min(max(min_lane, 1), max(L, 1))
        max_in_rows = max(256, (2 * target_bytes) // (min_lane * itemsize))

    if T <= max_in_rows:
        return _dw_time_conv_single(
            x2d, w_period, period=period, k_rf=k_rf, pad=pad,
            target_bytes=target_bytes, vmem_limit=vmem_limit)

    # Robustness path for very long sequences: chunk the time axis so every
    # pallas_call keeps a bounded block size.  Interior chunks need no zero
    # padding -- only a (k_rf-1)-row halo re-read; boundary zeros are a few
    # rows on the first/last chunk only.
    t_chunk = max(1, int(max_in_rows) - (k_rf - 1))
    pieces = []
    s = 0
    while s < t_out:
        n = min(t_chunk, t_out - s)
        in_lo = s - pad
        in_hi = s + n + k_rf - 1 - pad
        lo_c, hi_c = max(in_lo, 0), min(in_hi, T)
        xs = x2d[lo_c:hi_c]
        lo_p, hi_p = lo_c - in_lo, in_hi - hi_c
        if lo_p or hi_p:
            xs = jnp.pad(xs, ((lo_p, hi_p), (0, 0)))
        pieces.append(_dw_time_conv_single(
            xs, w_period, period=period, k_rf=k_rf, pad=0,
            target_bytes=target_bytes, vmem_limit=vmem_limit))
        s += n
    return jnp.concatenate(pieces, axis=0)


class STSCTemporalConv:
    """JAX/Pallas port of STSC_Temporal_Conv (bias-free depthwise temporal conv)."""

    def __init__(self, channels, dimension=4, time_rf=2, key=None, max_in_rows=None):
        assert dimension in (4, 2), "dimension must be 4 or 2"
        self.channels = channels
        self.dimension = dimension
        self.time_rf = time_rf
        self.time_padding = (time_rf - 1) // 2
        self.max_in_rows = max_in_rows          # optional cap for the T-chunking path
        if key is None:
            key = jax.random.PRNGKey(0)
        # PyTorch Conv default init: U(-1/sqrt(fan_in), 1/sqrt(fan_in));
        # depthwise => fan_in = 1 * time_rf.  Weight stored as (C, time_rf).
        bound = 1.0 / (time_rf ** 0.5)
        self.weight = jax.random.uniform(
            key, (channels, time_rf), jnp.float32, -bound, bound)

    def __call__(self, x_seq):
        assert x_seq.ndim in (3, 5), (
            f"expected 3D or 5D input [T,B,N] or [T,B,C,H,W], got {x_seq.shape}")
        K = self.time_rf
        if x_seq.ndim == 5:
            T, B, C, H, W = x_seq.shape
            assert C == self.channels
            HW = H * W
            # Free reshape: [T,B,C,H,W] -> [T, B*C*H*W].  No transposes.
            x2d = x_seq.reshape(T, B * C * HW)
            # Compact per-period weight: lane c*HW + hw -> weight[c, k].
            w_period = jnp.repeat(self.weight.T, HW, axis=1).astype(x_seq.dtype)  # (K, C*HW)
            out2d = _dw_time_conv(
                x2d, w_period, period=C * HW, k_rf=K, pad=self.time_padding,
                max_in_rows=self.max_in_rows)
            return out2d.reshape(out2d.shape[0], B, C, H, W)

        T, B, N = x_seq.shape
        assert N == self.channels
        # NOTE: for tiny B*N this single small block cannot beat a fused XLA
        # elementwise op (grid-launch overhead dominates); kept on the Pallas
        # path for uniformity.
        x2d = x_seq.reshape(T, B * N)                                        # free reshape
        w_period = self.weight.T.astype(x_seq.dtype)                         # (K, N)
        out2d = _dw_time_conv(
            x2d, w_period, period=N, k_rf=K, pad=self.time_padding,
            max_in_rows=self.max_in_rows)
        return out2d.reshape(out2d.shape[0], B, N)


# ------------------------- pure-JAX references -------------------------------

def ref_forward_5d(x_seq, w, pad):
    T = x_seq.shape[0]
    K = w.shape[1]
    xp = jnp.pad(x_seq, ((pad, pad), (0, 0), (0, 0), (0, 0), (0, 0)))
    T_out = T + 2 * pad - K + 1
    out = jnp.zeros((T_out,) + x_seq.shape[1:], x_seq.dtype)
    for k in range(K):
        out = out + w[:, k][None, None, :, None, None] * xp[k:k + T_out]
    return out


def ref_forward_3d(x_seq, w, pad):
    T = x_seq.shape[0]
    K = w.shape[1]
    xp = jnp.pad(x_seq, ((pad, pad), (0, 0), (0, 0)))
    T_out = T + 2 * pad - K + 1
    out = jnp.zeros((T_out,) + x_seq.shape[1:], x_seq.dtype)
    for k in range(K):
        out = out + w[:, k][None, None, :] * xp[k:k + T_out]
    return out


if __name__ == "__main__":
    key = jax.random.PRNGKey(0)
    kx, kw = jax.random.split(key)

    # dimension=4 path: x_seq is [T, B, C, H, W]
    T, B, C, H, W = 8, 2, 4, 16, 16
    x5 = jax.random.normal(kx, (T, B, C, H, W), jnp.float32)

    # Default even time_rf=2 (pad=0 -> T_out = T-1, matches PyTorch behavior).
    mod5 = STSCTemporalConv(channels=C, dimension=4, time_rf=2, key=kw)
    y5 = jax.block_until_ready(mod5(x5))
    r5 = ref_forward_5d(x5, mod5.weight, mod5.time_padding)
    assert y5.shape == r5.shape, (y5.shape, r5.shape)
    assert jnp.allclose(y5, r5, atol=1e-5, rtol=1e-5)

    # Odd time_rf=3 (pad=1, "same" length) exercises the in-kernel halo path.
    mod5b = STSCTemporalConv(channels=C, dimension=4, time_rf=3, key=kw)
    y5b = jax.block_until_ready(mod5b(x5))
    r5b = ref_forward_5d(x5, mod5b.weight, mod5b.time_padding)
    assert y5b.shape == r5b.shape, (y5b.shape, r5b.shape)
    assert jnp.allclose(y5b, r5b, atol=1e-5, rtol=1e-5)

    # dimension=2 path: x_seq is [T, B, N]
    x3 = jax.random.normal(kx, (T, B, C), jnp.float32)
    mod3 = STSCTemporalConv(channels=C, dimension=2, time_rf=2, key=kw)
    y3 = jax.block_until_ready(mod3(x3))
    r3 = ref_forward_3d(x3, mod3.weight, mod3.time_padding)
    assert y3.shape == r3.shape, (y3.shape, r3.shape)
    assert jnp.allclose(y3, r3, atol=1e-5, rtol=1e-5)

    # Long-sequence robustness path: force a tiny row cap so the wrapper-level
    # time chunking (halo re-read, pad handled at chunk edges) is exercised.
    mod5c = STSCTemporalConv(channels=C, dimension=4, time_rf=3, key=kw, max_in_rows=5)
    y5c = jax.block_until_ready(mod5c(x5))
    assert y5c.shape == r5b.shape, (y5c.shape, r5b.shape)
    assert jnp.allclose(y5c, r5b, atol=1e-5, rtol=1e-5)

    print("KERNEL_OK")
</pallas_src>

<mosaic_0001>
module attributes {stable_mosaic.version = 11 : i64} {
  func.func @_dw_temporal_conv_kernel(%arg0: i32, %arg1: memref<2x1024xf32, #tpu.memory_space<vmem>>, %arg2: memref<8x1024xf32, #tpu.memory_space<vmem>>, %arg3: memref<7x1024xf32, #tpu.memory_space<vmem>>) attributes {dimension_semantics = [#tpu.dimension_semantics<parallel>], iteration_bounds = array<i64: 2>, scalar_prefetch = 0 : i64, scratch_operands = 0 : i64, tpu.core_type = #tpu.core_type<tc>, window_params = [{pipeline_mode = #tpu.pipeline_mode<synchronous>, transform_indices = @transform_0, window_bounds = array<i64: 2, 1024>}, {transform_indices = @transform_1, window_bounds = array<i64: 8, 1024>}, {transform_indices = @transform_2, window_bounds = array<i64: 7, 1024>}]} {
    %c0 = arith.constant 0 : index
    %c0_0 = arith.constant 0 : index
    %0 = vector.load %arg1[%c0, %c0_0] : memref<2x1024xf32, #tpu.memory_space<vmem>>, vector<2x1024xf32>
    %1 = vector.extract_strided_slice %0 {offsets = [0, 0], sizes = [1, 1024], strides = [1, 1]} : vector<2x1024xf32> to vector<1x1024xf32>
    %c0_1 = arith.constant 0 : index
    %c0_2 = arith.constant 0 : index
    %2 = vector.load %arg2[%c0_1, %c0_2] : memref<8x1024xf32, #tpu.memory_space<vmem>>, vector<7x1024xf32>
    %3 = vector.broadcast %1 : vector<1x1024xf32> to vector<7x1024xf32>
    %4 = arith.mulf %3, %2 : vector<7x1024xf32>
    %5 = vector.extract_strided_slice %0 {offsets = [1, 0], sizes = [1, 1024], strides = [1, 1]} : vector<2x1024xf32> to vector<1x1024xf32>
    %c1 = arith.constant 1 : index
    %c0_3 = arith.constant 0 : index
    %6 = vector.load %arg2[%c1, %c0_3] : memref<8x1024xf32, #tpu.memory_space<vmem>>, vector<7x1024xf32>
    %7 = vector.broadcast %5 : vector<1x1024xf32> to vector<7x1024xf32>
    %8 = arith.mulf %7, %6 : vector<7x1024xf32>
    %9 = arith.addf %4, %8 : vector<7x1024xf32>
    %c0_4 = arith.constant 0 : index
    %c0_5 = arith.constant 0 : index
    %10 = vector.load %arg3[%c0_4, %c0_5] : memref<7x1024xf32, #tpu.memory_space<vmem>>, vector<7x1024xf32>
    tpu.vector_store %arg3[%c0_4, %c0_5], %9 {strides = array<i32>} : memref<7x1024xf32, #tpu.memory_space<vmem>>, vector<7x1024xf32>,
    return
  }
  func.func @transform_0(%arg0: i32) -> (i32, i32) {
    %c0_i32 = arith.constant 0 : i32
    %c0_i32_0 = arith.constant 0 : i32
    %c0_i32_1 = arith.constant 0 : i32
    return %c0_i32, %c0_i32_0 : i32, i32
  }
  func.func @transform_1(%arg0: i32) -> (i32, i32) {
    %c0_i32 = arith.constant 0 : i32
    %c0_i32_0 = arith.constant 0 : i32
    return %c0_i32, %arg0 : i32, i32
  }
  func.func @transform_2(%arg0: i32) -> (i32, i32) {
    %c0_i32 = arith.constant 0 : i32
    %c0_i32_0 = arith.constant 0 : i32
    return %c0_i32, %arg0 : i32, i32
  }
}

</mosaic_0001>

<bundles_post_ra>
// kernel: tpu_custom_call.1
= control target key start
LH: loop header
LB: loop body
LE: loop exit
PB: predicated region body
PF: predicated region fallthrough
CT: control target
= control target key end

     0   :  { %7 = vsyncpa [#allocation3], 0  ;;  %s964_s0 = inlined_call_operand.hbm [shape: f32[2,1024], index: 0, kind: input, shape index: {}]   ;;  %s965_s1 = inlined_call_operand.hbm [shape: f32[8,2048], index: 1, kind: input, shape index: {}]   ;;  %s966_s2 = inlined_call_operand.hbm [shape: f32[7,2048], index: 2, kind: output, shape index: {}]  }
   0x1   :  { %8 = vsyncpa [#allocation6], 0 }
   0x2   :  { %10 = vsyncpa [#allocation6 + $0x1], 0 }
   0x3   :  { %11 = vsyncpa [#allocation4], 0 }
   0x4   :  { %13 = vsyncpa [#allocation4 + $0x1], 0  ;;  %s709_s9 = smov 0   ;;  %s711_s10 = smov 0  }
   0x5   :  { %s713_s11 = smov 0   ;;  %s715_s12 = smov 0  }
   0x6 LB: > { %s730_s13 = sadd.s32 4294967295, %s689_s12   ;;  %s492_s14 = sadd.s32 4294967294, %s689_s12   ;;  %s689_s12 = sphi %s715_s12, %s989_s12   ;;  %s685_s11 = sphi %s713_s11, %s988_s11   ;;  %s681_s10 = sphi %s711_s10, %s987_s10   ;;  %s677_s9 = sphi %s709_s9, %s986_s9  }
   0x7   : > { %p60_p0 = scmp.ne.s32.totalorder %s681_s10, %s677_s9  ;;  %p967_p1 = scmp.eq.s32.totalorder %s730_s13, 0 }
   0x8   : > { %p90_p3 = scmp.eq.s32.totalorder %s492_s14, 1  ;;  %p493_p5 = scmp.ge.s32.totalorder %s689_s12, 1 }
   0x9   : > { %p739_p4 = por %p967_p1, %p60_p0  ;;  %p97_p7 = scmp.lt.s32.totalorder %s689_s12, 3 }
   0xa   : > { %p744_p6 = por %p90_p3, %p60_p0  ;;  %s691_s18 = smov [#allocation2]  }
   0xb   : > { %s971_s15 = scalar_select %p739_p4, 1, 0 }
   0xc   : > { %s972_s16 = scalar_select %p744_p6, 1, 0 }
   0xd   : > { %p749_p8 = pnand %p493_p5, %p97_p7  ;;  %s110_s19 = sshll.u32 %s691_s18, 4  ;;  %s111_s19 = int_to_ptr.vmem [resolvable:$true] %s110_s19 }
   0xe   : > { %s757_s20 = sadd.s32 1, %s689_s12   ;;  %s47_s24 = sadd.s32 1, %s685_s11 }
   0xf   : > { %s973_s17 = scalar_select %p749_p8, 1, 0 }
  0x10   : > { %p518_p10 = pneg %p749_p8  ;;  %s44_s22 = ssub.s32 %s689_s12, %s757_s20 }
  0x11   : > { %p767_p12 = scmp.eq.s32.totalorder %s44_s22, 0  ;;  %p54_p13 = scmp.ne.s32.totalorder %s685_s11, %s681_s10 }
  0x12   : > { %p761_p11 = pnand %p518_p10, %p967_p1  ;;  %s578_s25 = scalar_lea.vmem %s111_s19, 256 }
  0x13   : > { %p579_p3 = scmp.ne.s32.totalorder %s111_s19, %s578_s25  ;;  %p586_p9 = scmp.lt.s32.totalorder %s111_s19, %s111_s19 }
  0x14   : > { %p569_p0 = pneg %p761_p11  ;;  %p587_p2 = scmp.lt.s32.totalorder %s578_s25, %s578_s25 }
  0x16   : > { %p581_p5 = pnand %p579_p3, %p569_p0  ;;  %p588_p10 = por %p587_p2, %p586_p9 }
  0x18   : > { %p582_p7 = pneg %p581_p5 }
  0x1a   : > { %p589_p1 = pnand %p588_p10, %p582_p7 }
  0x1c   : > { %592 = shalt.err (!%p589_p1)
}
  0x1d   : > { %521 = dma.hbm_to_vmem [thread:$0]  (!%p761_p11), %s964_s0, 256, %s111_s19, [#allocation3]  }
  0x1e   : > { %s784_s28 = scalar_select %p767_p12, %s685_s11, %s47_s24  }
  0x1f   : > { %p55_p1 = scmp.eq.s32.totalorder %s689_s12, 0  ;;  %p976_p2 = scmp.eq.s32.totalorder %s730_s13, 1 }
  0x20   : > { %p531_p0 = scmp.lt.s32.totalorder %s689_s12, 2  ;;  %s121_s30 = sand.u32 1, %s685_s11  }
  0x21   : > { %p792_p9 = por %p976_p2, %p54_p13  ;;  %p56_p3 = por %p55_p1, %p54_p13 }
  0x22   : > { %s496_s3 = sshll.u32 %s121_s30, 6  ;;  %s508_s4 = sshll.u32 %s689_s12, 10 }
  0x23   : > { %s977_s29 = scalar_select %p792_p9, 1, 0 }
  0x24   : > { %s805_s7 = scalar_lea.hbm %s965_s1, %s508_s4  ;;  %s125_s8 = scalar_lea.vmem [#allocation5], %s496_s3 }
  0x25   : > { %s133_s14 = sshll.u32 %s125_s8, 4  ;;  %p807_p11 = pnand %p531_p0, %p56_p3  ;;  %s134_s14 = int_to_ptr.vmem [resolvable:$true] %s133_s14 }
  0x26   : > { %s122_s19 = scalar_lea.sflag [#allocation6], %s121_s30  ;;  %s593_s21 = scalar_lea.hbm %s805_s7, 1024 }
  0x27   : > { %p594_p12 = scmp.ne.s32.totalorder %s805_s7, %s593_s21  ;;  %p595_p13 = pneg %p807_p11 }
  0x28   : > { %s598_s24 = scalar_lea.hbm %s965_s1, 2048  ;;  %p599_p10 = scmp.lt.s32.totalorder %s805_s7, %s965_s1 }
  0x29   : > { %p596_p5 = pnand %p595_p13, %p594_p12  ;;  %p600_p1 = scmp.lt.s32.totalorder %s598_s24, %s593_s21 }
  0x2b   : > { %p597_p7 = pneg %p596_p5  ;;  %p601_p2 = por %p600_p1, %p599_p10 }
  0x2d   : > { %p602_p0 = pnand %p601_p2, %p597_p7 }
  0x2f   : > { %605 = shalt.err (!%p602_p0)
}
  0x30   : > { %s606_s27 = scalar_lea.vmem %s134_s14, 1024  ;;  %s692_s30 = smov [#allocation5]  }
  0x31   : > { %p607_p3 = scmp.ne.s32.totalorder %s134_s14, %s606_s27  ;;  %s611_s3 = sshll.u32 %s692_s30, 4  ;;  %s612_s3 = int_to_ptr.vmem [resolvable:$false] %s611_s3 }
  0x32   : > { %s613_s4 = scalar_lea.vmem %s612_s3, 2048  ;;  %p614_p12 = scmp.lt.s32.totalorder %s134_s14, %s612_s3 }
  0x33   : > { %p609_p6 = pnand %p607_p3, %p595_p13  ;;  %p615_p5 = scmp.lt.s32.totalorder %s613_s4, %s606_s27 }
  0x35   : > { %p610_p9 = pneg %p609_p6  ;;  %p616_p4 = por %p615_p5, %p614_p12 }
  0x37   : > { %p617_p8 = pnand %p616_p4, %p610_p9 }
  0x39   : > { %620 = shalt.err (!%p617_p8)
}
  0x3a   : > { %525 = dma.hbm_to_vmem [thread:$0]  (!%p807_p11), %s805_s7, 1024, %s134_s14, %s122_s19  }
  0x3b   : > { %p979_p7 = scmp.ne.s32.totalorder %s973_s17, 0 }
  0x3c   : > { %p980_p10 = scmp.eq.s32.totalorder (!%p979_p7), %s730_s13, 0 }
  0x3d   : > { %142 = sbr.rel (%p979_p7) target bundleno = 112 (0x70), region = 28 }
  0x42   : > { %664 = dma.done.wait (%p980_p10), [#allocation3], 256   ;;  %p981_p6 = pmov %p980_p10 }
  0x43   : > { %s832_s5 = sand.u32 1, %s681_s10   ;;  %p982_p4 = scmp.ne.s32.totalorder %s971_s15, 0 }
  0x44   : > { %666 = vsyncadd (%p981_p6), [#allocation3], 4294967040  ;;  %s501_s6 = sshll.u32 %s832_s5, 6  ;;  %s149_s8 = scalar_lea.sflag [#allocation6], %s832_s5 }
  0x45   : > { %s838_s7 = scalar_lea.vmem [#allocation5], %s501_s6 }
  0x46   : > { %668 = dma.done.wait (%p982_p4), %s149_s8, 1024  }
  0x47   : > { %670 = vsyncadd (%p982_p4), %s149_s8, 4294966272  ;;  %v187_v0 = vlaneseq  ;;  %v175_v10 = vld [vmem:[#allocation2] sm:$0xff]  ;;  %v177_v11 = vld [vmem:[%s838_s7] sm:$0x7f]  ;;  %s896_s15 = scalar_lea.vmem [#allocation7], %s501_s6  ;;  %s509_s17 = sshll.u32 %s730_s13, 10 }
  0x48   : > { %v267_v13 = vld [vmem:[%s838_s7] sm:$0xfe]  ;;  %v178_v17 = vld [vmem:[%s838_s7 + $0x8] sm:$0x7f]  ;;  %v179_v19 = vld [vmem:[%s838_s7 + $0x10] sm:$0x7f]  ;;  %s925_s21 = scalar_lea.hbm %s966_s2, %s509_s17 }
  0x49   : > { %v844_v1 = vshrl.u32 %v187_v0, 7  ;;  %v268_v18 = vld [vmem:[%s838_s7 + $0x8] sm:$0xfe]  ;;  %v269_v28 = vld [vmem:[%s838_s7 + $0x10] sm:$0xfe]  ;;  %v176_v35 = vld [vmem:[#allocation2 + $0x8] sm:$0xff] }
  0x4a   : > { %v180_v29 = vld [vmem:[%s838_s7 + $0x18] sm:$0x7f]  ;;  %v181_v50 = vld [vmem:[%s838_s7 + $0x20] sm:$0x7f]  ;;  %v182_v58 = vld [vmem:[%s838_s7 + $0x28] sm:$0x7f] }
  0x4b   : > { %v847_v2 = vsub.s32 0, %v844_v1  ;;  %v850_v3 = vsub.s32 1, %v844_v1  ;;  %v193_v4 = vsub.s32 2, %v844_v1  ;;  %v281_v5 = vsub.s32 3, %v844_v1  ;;  %v270_v30 = vld [vmem:[%s838_s7 + $0x18] sm:$0xfe] }
  0x4c   : > { %v197_v6 = vsub.s32 4, %v844_v1  ;;  %v285_v7 = vsub.s32 5, %v844_v1  ;;  %v201_v8 = vsub.s32 6, %v844_v1  ;;  %v289_v9 = vsub.s32 7, %v844_v1  ;;  %v271_v51 = vld [vmem:[%s838_s7 + $0x20] sm:$0xfe] }
  0x4d   : > { %v190_v12 = vrot.slane %v175_v10, %v847_v2  ;;  %v278_v14 = vrot.slane %v175_v10, %v850_v3  ;;  %v194_v15 = vrot.slane %v175_v10, %v193_v4  ;;  %v282_v16 = vrot.slane %v175_v10, %v281_v5  ;;  %v272_v59 = vld [vmem:[%s838_s7 + $0x28] sm:$0xfe]  ;;  %s410_s14 = sshll.u32 %s896_s15, 4  ;;  %s396_s22 = scalar_lea.sflag [#allocation4], %s832_s5  ;;  %s411_s14 = int_to_ptr.vmem [resolvable:$true] %s410_s14 }
  0x4e   : > { %v198_v20 = vrot.slane %v175_v10, %v197_v6  ;;  %v286_v21 = vrot.slane %v175_v10, %v285_v7  ;;  %v202_v22 = vrot.slane %v175_v10, %v201_v8  ;;  %v290_v23 = vrot.slane %v175_v10, %v289_v9  ;;  %s621_s23 = scalar_lea.vmem %s411_s14, 1024  ;;  %p983_p9 = scmp.ne.s32.totalorder %s977_s29, 0 }
  0x4f   : > { %v230_v24 = vrot.slane %v190_v12, %v847_v2  ;;  %v318_v25 = vrot.slane %v278_v14, %v850_v3  ;;  %v234_v26 = vrot.slane %v194_v15, %v847_v2  ;;  %v322_v27 = vrot.slane %v282_v16, %v850_v3  ;;  %v273_v14 = vld [vmem:[%s838_s7 + $0x30] sm:$0xfe]  ;;  %p622_p8 = scmp.ne.s32.totalorder %s411_s14, %s621_s23  ;;  %s693_s13 = smov [#allocation7]  }
  0x50   : > { %v238_v31 = vrot.slane %v198_v20, %v847_v2  ;;  %v326_v32 = vrot.slane %v286_v21, %v850_v3  ;;  %v242_v33 = vrot.slane %v202_v22, %v847_v2  ;;  %v330_v34 = vrot.slane %v290_v23, %v850_v3  ;;  %s625_s24 = sshll.u32 %s693_s13, 4  ;;  %s626_s24 = int_to_ptr.vmem [resolvable:$false] %s625_s24 }
  0x51   : > { %v259_v36 = vmul.f32 %v230_v24, %v177_v11  ;;  %v347_v37 = vmul.f32 %v318_v25, %v267_v13  ;;  %v260_v38 = vmul.f32 %v234_v26, %v178_v17  ;;  %v348_v39 = vmul.f32 %v322_v27, %v268_v18  ;;  %v183_v13 = vld [vmem:[%s838_s7 + $0x30] sm:$0x7f]  ;;  %v184_v18 = vld [vmem:[%s838_s7 + $0x38] sm:$0x7f]  ;;  %p623_p11 = pnand %p622_p8, %p983_p9  ;;  %s627_s25 = scalar_lea.vmem %s626_s24, 2048 }
  0x52   : > { %v261_v40 = vmul.f32 %v238_v31, %v179_v19  ;;  %v349_v41 = vmul.f32 %v326_v32, %v269_v28  ;;  %v262_v42 = vmul.f32 %v242_v33, %v180_v29  ;;  %v350_v43 = vmul.f32 %v330_v34, %v270_v30  ;;  %v274_v19 = vld [vmem:[%s838_s7 + $0x38] sm:$0xfe]  ;;  %p628_p1 = scmp.lt.s32.totalorder %s411_s14, %s626_s24  ;;  %p629_p2 = scmp.lt.s32.totalorder %s627_s25, %s621_s23 }
  0x53   : > { %v363_v44 = vrot.slane %v347_v37, 1  ;;  %v364_v45 = vrot.slane %v348_v39, 1  ;;  %v206_v46 = vrot.slane %v176_v35, %v847_v2  ;;  %v294_v47 = vrot.slane %v176_v35, %v850_v3  ;;  %p624_p13 = pneg %p623_p11 }
  0x54   : > { %v365_v48 = vrot.slane %v349_v41, 1  ;;  %v366_v49 = vrot.slane %v350_v43, 1  ;;  %v210_v52 = vrot.slane %v176_v35, %v193_v4  ;;  %v298_v53 = vrot.slane %v176_v35, %v281_v5  ;;  %p630_p0 = por %p629_p2, %p628_p1 }
  0x55   : > { %v379_v54 = vadd.f32 %v363_v44, %v259_v36  ;;  %v380_v55 = vadd.f32 %v364_v45, %v260_v38  ;;  %v246_v56 = vrot.slane %v206_v46, %v847_v2  ;;  %v334_v57 = vrot.slane %v294_v47, %v850_v3 }
  0x56   : > { %v381_v60 = vadd.f32 %v365_v48, %v261_v40  ;;  %v382_v61 = vadd.f32 %v366_v49, %v262_v42  ;;  %v250_v62 = vrot.slane %v210_v52, %v847_v2  ;;  %v338_v63 = vrot.slane %v298_v53, %v850_v3  ;;  %p631_p3 = pnand %p630_p0, %p624_p13 }
  0x57   : > { %387 = vst [vmem:[%s896_s15] sm:$0x7f] %v379_v54  ;;  %388 = vst [vmem:[%s896_s15 + $0x8] sm:$0x7f] %v380_v55  ;;  %v263_v0 = vmul.f32 %v246_v56, %v181_v50  ;;  %v351_v4 = vmul.f32 %v334_v57, %v271_v51  ;;  %v214_v5 = vrot.slane %v176_v35, %v197_v6 }
  0x58   : > { %v302_v10 = vrot.slane %v176_v35, %v285_v7  ;;  %389 = vst [vmem:[%s896_s15 + $0x10] sm:$0x7f] %v381_v60  ;;  %390 = vst [vmem:[%s896_s15 + $0x18] sm:$0x7f] %v382_v61  ;;  %v264_v11 = vmul.f32 %v250_v62, %v182_v58  ;;  %v352_v12 = vmul.f32 %v338_v63, %v272_v59 }
  0x59   : > { %v218_v15 = vrot.slane %v176_v35, %v201_v8  ;;  %v306_v16 = vrot.slane %v176_v35, %v289_v9  ;;  %v367_v17 = vrot.slane %v351_v4, 1  ;;  %v254_v6 = vrot.slane %v214_v5, %v847_v2 }
  0x5a   : > { %v342_v7 = vrot.slane %v302_v10, %v850_v3  ;;  %v368_v20 = vrot.slane %v352_v12, 1 }
  0x5b   : > { %v258_v21 = vrot.slane %v218_v15, %v847_v2  ;;  %v346_v22 = vrot.slane %v306_v16, %v850_v3  ;;  %v383_v8 = vadd.f32 %v367_v17, %v263_v0  ;;  %v265_v1 = vmul.f32 %v254_v6, %v183_v13 }
  0x5c   : > { %v353_v9 = vmul.f32 %v342_v7, %v273_v14  ;;  %v384_v23 = vadd.f32 %v368_v20, %v264_v11 }
  0x5d   : > { %v266_v24 = vmul.f32 %v258_v21, %v184_v18  ;;  %v354_v25 = vmul.f32 %v346_v22, %v274_v19  ;;  %391 = vst [vmem:[%s896_s15 + $0x20] sm:$0x7f] %v383_v8 }
  0x5e   : > { %v369_v26 = vrot.slane %v353_v9, 1  ;;  %392 = vst [vmem:[%s896_s15 + $0x28] sm:$0x7f] %v384_v23 }
  0x5f   : > { %v370_v27 = vrot.slane %v354_v25, 1 }
  0x60   : > { %v385_v28 = vadd.f32 %v369_v26, %v265_v1 }
  0x61   : > { %v386_v2 = vadd.f32 %v370_v27, %v266_v24 }
  0x62   : > { %393 = vst [vmem:[%s896_s15 + $0x30] sm:$0x7f] %v385_v28 }
  0x63   : > { %394 = vst [vmem:[%s896_s15 + $0x38] sm:$0x7f] %v386_v2 }
  0x64   : > { %634 = shalt.err (!%p631_p3)
}
  0x65   : > { %s635_s26 = scalar_lea.hbm %s925_s21, 1024  ;;  %s639_s3 = scalar_lea.hbm %s966_s2, 2048 }
  0x66   : > { %p636_p12 = scmp.ne.s32.totalorder %s925_s21, %s635_s26  ;;  %p640_p10 = scmp.lt.s32.totalorder %s925_s21, %s966_s2 }
  0x67   : > { %p641_p6 = scmp.lt.s32.totalorder %s639_s3, %s635_s26 }
  0x68   : > { %p637_p5 = pnand %p636_p12, %p983_p9 }
  0x69   : > { %p642_p4 = por %p641_p6, %p640_p10 }
  0x6a   : > { %p638_p7 = pneg %p637_p5 }
  0x6c   : > { %p643_p8 = pnand %p642_p4, %p638_p7 }
  0x6e   : > { %646 = shalt.err (!%p643_p8)
}
  0x6f   : > { %516 = dma.vmem_to_hbm [thread:$0]  (%p983_p9), %s411_s14, 1024, %s925_s21, %s396_s22  }
  0x70 PF: > { %s422_s6 = sand.u32 1, %s677_s9   ;;  %p984_p11 = scmp.ne.s32.totalorder %s972_s16, 0 }
  0x71   : > { %p985_p13 = scmp.ge.s32.totalorder %s689_s12, 2  ;;  %s423_s8 = scalar_lea.sflag [#allocation4], %s422_s6 }
  0x73   : > { %p527_p1 = pnand %p985_p13, %p984_p11 }
  0x75   : > { %p528_p2 = pneg %p527_p1 }
  0x77   : > { %672 = dma.done.wait (%p528_p2), %s423_s8, 1024  }
  0x78   : > { %674 = vsyncadd (%p528_p2), %s423_s8, 4294966272  ;;  %p16_p0 = scmp.ge.s32.totalorder %s757_s20, 4   ;;  %s986_s9 = smov %s681_s10 }
  0x79   : > { %s987_s10 = smov %s685_s11  ;;  %s988_s11 = smov %s784_s28 }
  0x7a   : > { %s989_s12 = smov %s757_s20  ;;  %18 = sbr.rel (!%p16_p0) target bundleno = 6 (0x6), region = 78 }
  0x7f   :  { %428 = vsyncpa [#allocation3], 1 }
  0x80   :  { %430 = vsyncpa [#allocation3 + $0x1], 1 }
  0x81   :  { %431 = vsyncpa [#allocation6], 1 }
  0x82   :  { %433 = vsyncpa [#allocation6 + $0x1], 1 }
  0x83   :  { %434 = vsyncpa [#allocation4], 1 }
  0x84   :  { %436 = vsyncpa [#allocation4 + $0x1], 1 }

</bundles_post_ra>
